<compile_context>
chip_gen: v5e
topology: v5e:2x2
jax: 0.10.0
libtpu: 0.0.40
codegen_flags: <defaults>
</compile_context>

<pallas_src>
import numpy as np
import jax
import jax.numpy as jnp
from jax.experimental import pallas as pl
from jax.experimental.pallas import tpu as pltpu


# --------------------------------------------------------------------------------------
# Glue: precompute dense operators (plain numpy / JAX, outside the kernel)
# --------------------------------------------------------------------------------------
def _butterworth_operator(Nt, dt, order, bw, f0):
    """Dense complex operator M (Nt x Nt) s.t. y = x @ M reproduces BaseFilter._butterworth."""
    j = np.arange(-(Nt / 2), Nt / 2)
    f = (j * (1.0 / Nt)) / dt
    H = 1.0 / (1.0 + 1j * ((f - f0) / bw) ** order)
    eye = np.eye(Nt, dtype=np.complex128)
    xf = np.fft.fftshift(np.fft.fft(eye, axis=1), axes=1)
    yf = H[None, :] * xf
    y = np.fft.ifft(np.fft.fftshift(yf, axes=1), axis=1)
    return y  # rows: input time sample, cols: output time sample


def _downsampling_matrix(Nt, each_filter_output):
    # TODO(synk): torchaudio transforms.Resample uses windowed-sinc polyphase resampling;
    # approximated here with a box-average downsampling matrix.
    k = Nt // each_filter_output
    D = np.zeros((Nt, each_filter_output), dtype=np.float32)
    for m in range(each_filter_output):
        D[m * k:(m + 1) * k, m] = 1.0 / k
    return D


def build_operators(Nt, dt, order, bw, f0, D, WT, b, n_filters, each):
    """Fold the whole forward into M2 [Nt, 2*Nt] bf16, P2 [2*Nt, F] bf16, b [1, F] f32."""
    F = WT.shape[1]

    M = _butterworth_operator(Nt, dt, order, bw, f0)
    Mr = np.real(M).astype(np.float32)
    Mi = np.imag(M).astype(np.float32)
    # Stacked Butterworth operator: real cols 0..Nt-1, imag cols Nt..2Nt-1. No K/N padding.
    M2 = np.concatenate([Mr, Mi], axis=1)                      # [Nt, 2*Nt]

    # Fold downsample + n_filters concat + layer1 into one [Nt, F] matrix, then stack it
    # twice so (y2*y2) @ P2 == (yr^2 + yi^2) @ P  (power detection folded into matmul-2).
    WT_np = np.asarray(WT, dtype=np.float32)                   # [n_filters*each, F]
    Wsum = np.zeros((each, F), dtype=np.float32)
    for k in range(n_filters):
        Wsum += WT_np[k * each:(k + 1) * each, :]
    P = np.asarray(D, dtype=np.float32) @ Wsum                 # [Nt, F]
    P2 = np.concatenate([P, P], axis=0)                        # [2*Nt, F]

    b2 = np.asarray(b, dtype=np.float32).reshape(1, F)

    return (jnp.asarray(M2, dtype=jnp.bfloat16),               # bf16: MXU-native
            jnp.asarray(P2, dtype=jnp.bfloat16),               # bf16: fast MXU path
            jnp.asarray(b2, dtype=jnp.float32))


# --------------------------------------------------------------------------------------
# Pallas kernel
# --------------------------------------------------------------------------------------
def _base_filter_kernel(x_ref, m2_ref, p2_ref, b_ref, o_ref):
    # Cast to bf16 in-kernel (no wrapper-side pad/cast pass).
    xb = x_ref[...].astype(jnp.bfloat16)                                        # [tb, Nt]
    # Butterworth (folded, stacked real|imag): one bf16 MXU matmul, f32 accumulation.
    y2 = jnp.dot(xb, m2_ref[...], preferred_element_type=jnp.float32)           # [tb, 2*Nt]
    # Photodiode detection: |y|^2; real+imag summation is folded into P2 = [P; P].
    p = (y2 * y2).astype(jnp.bfloat16)                                          # [tb, 2*Nt]
    # Downsample + concat-n_filters + layer1, folded into one bf16 matmul + bias.
    o_ref[...] = jnp.dot(p, p2_ref[...], preferred_element_type=jnp.float32) + b_ref[...]


def base_filter_forward(x, M2, P2, b2, *, tb=None):
    B, Nt = x.shape
    F = P2.shape[1]

    # Sublane alignment only if the batch demands it (no-op for multiples of 8).
    B_p = ((B + 7) // 8) * 8
    if B_p != B:
        x = jnp.pad(x, ((0, B_p - B), (0, 0)))

    # Single grid step by default: one M2 weight push, no per-step overhead (v5e/v6e).
    # Pass tb = B_p // 2 on v7x at large batch to shard over both TensorCores.
    if tb is None or tb > B_p or B_p % tb != 0:
        tb = B_p
    grid = (B_p // tb,)

    flops = (2 * B_p * Nt * (2 * Nt)      # matmul 1
             + 2 * B_p * (2 * Nt)         # square
             + 2 * B_p * (2 * Nt) * F     # matmul 2
             + B_p * F)                   # bias
    bytes_accessed = (B_p * Nt * 4 + M2.size * 2 + P2.size * 2
                      + b2.size * 4 + B_p * F * 4)

    out = pl.pallas_call(
        _base_filter_kernel,
        out_shape=jax.ShapeDtypeStruct((B_p, F), jnp.float32),
        grid=grid,
        in_specs=[
            pl.BlockSpec((tb, Nt), lambda i: (i, 0)),        # x: streamed over batch
            pl.BlockSpec((Nt, 2 * Nt), lambda i: (0, 0)),    # M2: VMEM-resident
            pl.BlockSpec((2 * Nt, F), lambda i: (0, 0)),     # P2: VMEM-resident
            pl.BlockSpec((1, F), lambda i: (0, 0)),          # b:  VMEM-resident
        ],
        out_specs=pl.BlockSpec((tb, F), lambda i: (i, 0)),   # unpadded output, no slice
        compiler_params=pltpu.CompilerParams(
            dimension_semantics=("parallel",),               # batch steps are independent
        ),
        cost_estimate=pl.CostEstimate(
            flops=flops, transcendentals=0, bytes_accessed=bytes_accessed),
    )(x, M2, P2, b2)

    return out[:B] if B_p != B else out


# --------------------------------------------------------------------------------------
# Pure-JAX reference (original module math, full f32)
# --------------------------------------------------------------------------------------
def reference_forward(x, Mr, Mi, D, WT, b, n_filters):
    yr = x @ Mr
    yi = x @ Mi
    p = yr * yr + yi * yi
    d = p @ D
    z = jnp.concatenate([d] * n_filters, axis=1)
    return z @ WT + b


if __name__ == "__main__":
    # BaseFilter.__init__ constants / small example config
    input_features = 16
    output_features = 8
    n_filters = 4
    pooling = True
    ds_ratio = 2
    batch = 256                                      # fills the MXU M dimension

    symbol_rate = 100
    sps = 2
    Nt = input_features * sps                        # 32
    dt = 1.0 / symbol_rate / sps                     # 0.005
    each_filter_output = input_features // ds_ratio  # 8
    photodiode_order, photodiode_f0, photodiode_bw = 4, 0.0, 5.0

    # layer1 parameters: deterministic nn.Linear-style init
    key = jax.random.PRNGKey(0)
    kW, kb, kx = jax.random.split(key, 3)
    fan_in = n_filters * each_filter_output
    bound = 1.0 / np.sqrt(fan_in)
    W = jax.random.uniform(kW, (output_features, fan_in), minval=-bound, maxval=bound,
                           dtype=jnp.float32)
    b = jax.random.uniform(kb, (output_features,), minval=-bound, maxval=bound,
                           dtype=jnp.float32)
    WT = W.T                                         # [fan_in, output_features]

    D = _downsampling_matrix(Nt, each_filter_output)

    # Folded bf16 operators (pure precompute glue, no zero padding)
    M2, P2, b2 = build_operators(
        Nt, dt, photodiode_order, photodiode_bw, photodiode_f0,
        D, WT, b, n_filters, each_filter_output)

    # Example input signal
    x = jax.random.normal(kx, (batch, Nt), dtype=jnp.float32)

    out = base_filter_forward(x, M2, P2, b2)
    out = jax.block_until_ready(out)

    # Reference in full f32 against the original (unfolded) math
    M = _butterworth_operator(Nt, dt, photodiode_order, photodiode_bw, photodiode_f0)
    Mr = jnp.asarray(np.real(M), dtype=jnp.float32)
    Mi = jnp.asarray(np.imag(M), dtype=jnp.float32)
    ref = reference_forward(x, Mr, Mi, jnp.asarray(D), WT, b, n_filters)
    np.testing.assert_allclose(np.asarray(out), np.asarray(ref), rtol=5e-2, atol=5e-2)

    print("KERNEL_OK")
</pallas_src>

<mosaic_0001>
module attributes {stable_mosaic.version = 11 : i64} {
  func.func @_base_filter_kernel(%arg0: i32, %arg1: memref<256x32xf32, #tpu.memory_space<vmem>>, %arg2: memref<32x64xbf16, #tpu.memory_space<vmem>>, %arg3: memref<64x8xbf16, #tpu.memory_space<vmem>>, %arg4: memref<1x8xf32, #tpu.memory_space<vmem>>, %arg5: memref<256x8xf32, #tpu.memory_space<vmem>>) attributes {dimension_semantics = [#tpu.dimension_semantics<parallel>], iteration_bounds = array<i64: 1>, scalar_prefetch = 0 : i64, scratch_operands = 0 : i64, tpu.core_type = #tpu.core_type<tc>, window_params = [{transform_indices = @transform_0, window_bounds = array<i64: 256, 32>}, {pipeline_mode = #tpu.pipeline_mode<synchronous>, transform_indices = @transform_1, window_bounds = array<i64: 32, 64>}, {pipeline_mode = #tpu.pipeline_mode<synchronous>, transform_indices = @transform_2, window_bounds = array<i64: 64, 8>}, {pipeline_mode = #tpu.pipeline_mode<synchronous>, transform_indices = @transform_3, window_bounds = array<i64: 1, 8>}, {transform_indices = @transform_4, window_bounds = array<i64: 256, 8>}]} {
    %c0 = arith.constant 0 : index
    %c0_0 = arith.constant 0 : index
    %0 = vector.load %arg1[%c0, %c0_0] : memref<256x32xf32, #tpu.memory_space<vmem>>, vector<256x32xf32>
    %1 = arith.truncf %0 : vector<256x32xf32> to vector<256x32xbf16>
    %c0_1 = arith.constant 0 : index
    %c0_2 = arith.constant 0 : index
    %2 = vector.load %arg2[%c0_1, %c0_2] : memref<32x64xbf16, #tpu.memory_space<vmem>>, vector<32x64xbf16>
    %cst = arith.constant dense<0.000000e+00> : vector<256x64xf32>
    %3 = tpu.matmul %1, %2, %cst {dimension_numbers = #tpu.dot_dimension_numbers<[1], [0], [0], [1], [0, 0, 1, 1], [], []>} : vector<256x32xbf16>, vector<32x64xbf16>, vector<256x64xf32> -> vector<256x64xf32>
    %4 = arith.mulf %3, %3 : vector<256x64xf32>
    %5 = arith.truncf %4 : vector<256x64xf32> to vector<256x64xbf16>
    %c0_3 = arith.constant 0 : index
    %c0_4 = arith.constant 0 : index
    %6 = vector.load %arg3[%c0_3, %c0_4] : memref<64x8xbf16, #tpu.memory_space<vmem>>, vector<64x8xbf16>
    %cst_5 = arith.constant dense<0.000000e+00> : vector<256x8xf32>
    %7 = tpu.matmul %5, %6, %cst_5 {dimension_numbers = #tpu.dot_dimension_numbers<[1], [0], [0], [1], [0, 0, 1, 1], [], []>} : vector<256x64xbf16>, vector<64x8xbf16>, vector<256x8xf32> -> vector<256x8xf32>
    %c0_6 = arith.constant 0 : index
    %c0_7 = arith.constant 0 : index
    %8 = vector.load %arg4[%c0_6, %c0_7] : memref<1x8xf32, #tpu.memory_space<vmem>>, vector<1x8xf32>
    %9 = vector.broadcast %8 : vector<1x8xf32> to vector<256x8xf32>
    %10 = arith.addf %7, %9 : vector<256x8xf32>
    %c0_8 = arith.constant 0 : index
    %c0_9 = arith.constant 0 : index
    %11 = vector.load %arg5[%c0_8, %c0_9] : memref<256x8xf32, #tpu.memory_space<vmem>>, vector<256x8xf32>
    tpu.vector_store %arg5[%c0_8, %c0_9], %10 {strides = array<i32>} : memref<256x8xf32, #tpu.memory_space<vmem>>, vector<256x8xf32>,
    return
  }
  func.func @transform_0(%arg0: i32) -> (i32, i32) {
    %c0_i32 = arith.constant 0 : i32
    %c0_i32_0 = arith.constant 0 : i32
    return %arg0, %c0_i32 : i32, i32
  }
  func.func @transform_1(%arg0: i32) -> (i32, i32) {
    %c0_i32 = arith.constant 0 : i32
    %c0_i32_0 = arith.constant 0 : i32
    %c0_i32_1 = arith.constant 0 : i32
    return %c0_i32, %c0_i32_0 : i32, i32
  }
  func.func @transform_2(%arg0: i32) -> (i32, i32) {
    %c0_i32 = arith.constant 0 : i32
    %c0_i32_0 = arith.constant 0 : i32
    %c0_i32_1 = arith.constant 0 : i32
    return %c0_i32, %c0_i32_0 : i32, i32
  }
  func.func @transform_3(%arg0: i32) -> (i32, i32) {
    %c0_i32 = arith.constant 0 : i32
    %c0_i32_0 = arith.constant 0 : i32
    %c0_i32_1 = arith.constant 0 : i32
    return %c0_i32, %c0_i32_0 : i32, i32
  }
  func.func @transform_4(%arg0: i32) -> (i32, i32) {
    %c0_i32 = arith.constant 0 : i32
    %c0_i32_0 = arith.constant 0 : i32
    return %arg0, %c0_i32 : i32, i32
  }
}

</mosaic_0001>

<bundles_post_ra>
// kernel: tpu_custom_call.1
= control target key start
LH: loop header
LB: loop body
LE: loop exit
PB: predicated region body
PF: predicated region fallthrough
CT: control target
= control target key end

     0   :  { %vm82_vm0 = vcmask 261120   ;;  %vm304_vm1 = vcmask 523264   ;;  %vm442_vm2 = vcmask 64512   ;;  %s884_s1 = inlined_call_operand.vmem [shape: bf16[32,64], index: 1, kind: input, shape index: {}]   ;;  %s885_s0 = inlined_call_operand.vmem [shape: f32[256,32], index: 0, kind: input, shape index: {}]   ;;  %s886_s2 = inlined_call_operand.vmem [shape: bf16[64,8], index: 2, kind: input, shape index: {}]   ;;  %s887_s3 = inlined_call_operand.vmem [shape: f32[1,8], index: 3, kind: input, shape index: {}]   ;;  %s888_s4 = inlined_call_operand.vmem [shape: f32[256,8], index: 4, kind: output, shape index: {}]  }
   0x1   :  { %v536_v0 = vld [vmem:[%s884_s1 + $0x8] sm:$0xff]  ;;  %v535_v1 = vld [vmem:[%s884_s1] sm:$0xff]  ;;  %v20_v5 = vld [vmem:[%s885_s0 + $0x10] sm:$0xff] }
   0x2   :  { %137 = vmatpush.bf16.msra.mxu0 %v536_v0  ;;  %v18_v2 = vld [vmem:[%s885_s0] sm:$0xff]  ;;  %v19_v3 = vld [vmem:[%s885_s0 + $0x8] sm:$0xff]  ;;  %541 = vmatpush.bf16.msra.mxu3 %v536_v0  ;;  %v21_v6 = vld [vmem:[%s885_s0 + $0x18] sm:$0xff] }
   0x3   :  { %v50_v4 = vpack.c.bf16 %v19_v3, %v18_v2  ;;  %v51_v7 = vpack.c.bf16 %v21_v6, %v20_v5  ;;  %v22_v8 = vld [vmem:[%s885_s0 + $0x20] sm:$0xff]  ;;  %v23_v9 = vld [vmem:[%s885_s0 + $0x28] sm:$0xff]  ;;  %v24_v11 = vld [vmem:[%s885_s0 + $0x30] sm:$0xff] }
   0x4   :  { %v52_v10 = vpack.c.bf16 %v23_v9, %v22_v8  ;;  %v25_v12 = vld [vmem:[%s885_s0 + $0x38] sm:$0xff]  ;;  %v26_v14 = vld [vmem:[%s885_s0 + $0x40] sm:$0xff]  ;;  %v27_v15 = vld [vmem:[%s885_s0 + $0x48] sm:$0xff] }
   0x5   :  { %v53_v13 = vpack.c.bf16 %v25_v12, %v24_v11  ;;  %v54_v16 = vpack.c.bf16 %v27_v15, %v26_v14  ;;  %v28_v17 = vld [vmem:[%s885_s0 + $0x50] sm:$0xff]  ;;  %v29_v18 = vld [vmem:[%s885_s0 + $0x58] sm:$0xff]  ;;  %v30_v21 = vld [vmem:[%s885_s0 + $0x60] sm:$0xff] }
   0x6   :  { %138 = vmatpush.bf16.msra.mxu0 %v535_v1  ;;  %542 = vmatpush.bf16.msra.mxu3 %v535_v1  ;;  %v55_v19 = vpack.c.bf16 %v29_v18, %v28_v17  ;;  %v540_v20 = vld [vmem:[%s886_s2 + $0x18] sm:$0xff]  ;;  %v31_v22 = vld [vmem:[%s885_s0 + $0x68] sm:$0xff]  ;;  %v539_v24 = vld [vmem:[%s886_s2 + $0x10] sm:$0xff] }
   0x7   :  { %357 = vmatpush.bf16.msra.mxu1 %v540_v20  ;;  %543 = vmatpush.bf16.msra.mxu2 %v540_v20  ;;  %v56_v23 = vpack.c.bf16 %v31_v22, %v30_v21  ;;  %v36_v25 = vld [vmem:[%s885_s0 + $0x90] sm:$0xff]  ;;  %v37_v26 = vld [vmem:[%s885_s0 + $0x98] sm:$0xff]  ;;  %v538_v28 = vld [vmem:[%s886_s2 + $0x8] sm:$0xff] }
   0x8   :  { %v59_v27 = vpack.c.bf16 %v37_v26, %v36_v25  ;;  %v537_v29 = vld [vmem:[%s886_s2] sm:$0xff]  ;;  %v32_v30 = vld [vmem:[%s885_s0 + $0x70] sm:$0xff]  ;;  %v33_v31 = vld [vmem:[%s885_s0 + $0x78] sm:$0xff] }
   0x9   :  { %487 = vmatmul.msk.bf16.vlgmr.msra.gmra.mxu0 %vm82_vm0, %v50_v4  ;;  %v57_v32 = vpack.c.bf16 %v33_v31, %v32_v30  ;;  %v38_v33 = vld [vmem:[%s885_s0 + $0xa0] sm:$0xff]  ;;  %v39_v34 = vld [vmem:[%s885_s0 + $0xa8] sm:$0xff]  ;;  %v40_v40 = vld [vmem:[%s885_s0 + $0xb0] sm:$0xff] }
   0xa   :  { %496 = vmatmul.msk.bf16.vlgmr.msra.gmra.mxu3 %vm82_vm0, %v59_v27  ;;  %v60_v35 = vpack.c.bf16 %v39_v34, %v38_v33  ;;  %v34_v36 = vld [vmem:[%s885_s0 + $0x80] sm:$0xff]  ;;  %v35_v37 = vld [vmem:[%s885_s0 + $0x88] sm:$0xff]  ;;  %v41_v41 = vld [vmem:[%s885_s0 + $0xb8] sm:$0xff] }
   0xb   :  { %358 = vmatpush.bf16.msra.mxu1 %v539_v24  ;;  %544 = vmatpush.bf16.msra.mxu2 %v539_v24  ;;  %v58_v38 = vpack.c.bf16 %v35_v37, %v34_v36  ;;  %v61_v42 = vpack.c.bf16 %v41_v41, %v40_v40  ;;  %v42_v48 = vld [vmem:[%s885_s0 + $0xc0] sm:$0xff]  ;;  %v43_v49 = vld [vmem:[%s885_s0 + $0xc8] sm:$0xff]  ;;  %v44_v56 = vld [vmem:[%s885_s0 + $0xd0] sm:$0xff] }
   0xc   :  { %v62_v50 = vpack.c.bf16 %v43_v49, %v42_v48  ;;  %v45_v57 = vld [vmem:[%s885_s0 + $0xd8] sm:$0xff]  ;;  %v46_v0 = vld [vmem:[%s885_s0 + $0xe0] sm:$0xff]  ;;  %v47_v1 = vld [vmem:[%s885_s0 + $0xe8] sm:$0xff] }
   0xd   :  { %v63_v58 = vpack.c.bf16 %v45_v57, %v44_v56  ;;  %v64_v2 = vpack.c.bf16 %v47_v1, %v46_v0  ;;  %v48_v8 = vld [vmem:[%s885_s0 + $0xf0] sm:$0xff]  ;;  %v49_v9 = vld [vmem:[%s885_s0 + $0xf8] sm:$0xff]  ;;  %v714_v34 = vld [vmem:[%s887_s3] ss:$0 sm:$0xff] }
   0xf   :  { %359 = vmatpush.bf16.msra.mxu1 %v538_v28  ;;  %545 = vmatpush.bf16.msra.mxu2 %v538_v28 }
  0x13   :  { %360 = vmatpush.bf16.msra.mxu1 %v537_v29  ;;  %546 = vmatpush.bf16.msra.mxu2 %v537_v29 }
  0x19   :  { %488 = vmatmul.msk.bf16.gmra.mxu0 %vm82_vm0, %v51_v7 }
  0x1a   :  { %497 = vmatmul.msk.bf16.gmra.mxu3 %vm82_vm0, %v60_v35 }
  0x29   :  { %489 = vmatmul.msk.bf16.gmra.mxu0 %vm82_vm0, %v52_v10  ;;  %v65_v10 = vpack.c.bf16 %v49_v9, %v48_v8 }
  0x2a   :  { %498 = vmatmul.msk.bf16.gmra.mxu3 %vm82_vm0, %v61_v42 }
  0x39   :  { %490 = vmatmul.msk.bf16.gmra.mxu0 %vm82_vm0, %v53_v13 }
  0x3a   :  { %499 = vmatmul.msk.bf16.gmra.mxu3 %vm82_vm0, %v62_v50 }
  0x49   :  { %491 = vmatmul.msk.bf16.gmra.mxu0 %vm82_vm0, %v54_v16 }
  0x4a   :  { %500 = vmatmul.msk.bf16.gmra.mxu3 %vm82_vm0, %v63_v58 }
  0x59   :  { %492 = vmatmul.msk.bf16.gmra.mxu0 %vm82_vm0, %v55_v19 }
  0x5a   :  { %501 = vmatmul.msk.bf16.gmra.mxu3 %vm82_vm0, %v64_v2 }
  0x69   :  { %493 = vmatmul.msk.bf16.gmra.mxu0 %vm82_vm0, %v56_v23 }
  0x6a   :  { %502 = vmatmul.msk.bf16.gmra.mxu3 %vm82_vm0, %v65_v10 }
  0x79   :  { %494 = vmatmul.msk.bf16.gmra.mxu0 %vm82_vm0, %v57_v32 }
  0x86   :  { %v140_v39 = vpop.f32.mrf.mxu0 }
  0x87   :  { %v220_v44 = vmul.f32 %v140_v39, %v140_v39 }
  0x89   :  { %495 = vmatmul.msk.bf16.gmra.mxu0 %vm82_vm0, %v58_v38 }
  0x8d   :  { %v185_v26 = vpop.f32.mrf.mxu3 }
  0x8e   :  { %v142_v43 = vpop.f32.mrf.mxu0 }
  0x8f   :  { %v221_v45 = vmul.f32 %v142_v43, %v142_v43 }
  0x91   :  { %v252_v46 = vpack.c.bf16 %v221_v45, %v220_v44  ;;  %v238_v44 = vmul.f32 %v185_v26, %v185_v26 }
  0x93   :  { %519 = vmatmul.msk.bf16.vlgmr.msra.gmra.mxu1 %vm304_vm1, %v252_v46 }
  0x95   :  { %v187_v31 = vpop.f32.mrf.mxu3 }
  0x96   :  { %v145_v47 = vpop.f32.mrf.mxu0  ;;  %v239_v45 = vmul.f32 %v187_v31, %v187_v31 }
  0x97   :  { %v222_v52 = vmul.f32 %v145_v47, %v145_v47 }
  0x98   :  { %v261_v48 = vpack.c.bf16 %v239_v45, %v238_v44 }
  0x9d   :  { %v190_v33 = vpop.f32.mrf.mxu3 }
  0x9e   :  { %v147_v51 = vpop.f32.mrf.mxu0 }
  0x9f   :  { %v223_v53 = vmul.f32 %v147_v51, %v147_v51 }
  0xa1   :  { %v253_v54 = vpack.c.bf16 %v223_v53, %v222_v52  ;;  %v240_v53 = vmul.f32 %v190_v33, %v190_v33 }
  0xa3   :  { %520 = vmatmul.msk.bf16.gmra.mxu1 %vm304_vm1, %v253_v54 }
  0xa5   :  { %v192_v41 = vpop.f32.mrf.mxu3 }
  0xa6   :  { %v150_v55 = vpop.f32.mrf.mxu0  ;;  %v241_v54 = vmul.f32 %v192_v41, %v192_v41 }
  0xa7   :  { %v224_v60 = vmul.f32 %v150_v55, %v150_v55 }
  0xa8   :  { %v262_v56 = vpack.c.bf16 %v241_v54, %v240_v53 }
  0xad   :  { %v195_v47 = vpop.f32.mrf.mxu3 }
  0xae   :  { %v152_v59 = vpop.f32.mrf.mxu0 }
  0xaf   :  { %v225_v61 = vmul.f32 %v152_v59, %v152_v59 }
  0xb1   :  { %v254_v62 = vpack.c.bf16 %v225_v61, %v224_v60  ;;  %v242_v61 = vmul.f32 %v195_v47, %v195_v47 }
  0xb3   :  { %521 = vmatmul.msk.bf16.gmra.mxu1 %vm304_vm1, %v254_v62 }
  0xb5   :  { %v197_v52 = vpop.f32.mrf.mxu3 }
  0xb6   :  { %v155_v63 = vpop.f32.mrf.mxu0  ;;  %v243_v62 = vmul.f32 %v197_v52, %v197_v52 }
  0xb7   :  { %v226_v4 = vmul.f32 %v155_v63, %v155_v63 }
  0xb8   :  { %v263_v1 = vpack.c.bf16 %v243_v62, %v242_v61 }
  0xbd   :  { %v200_v58 = vpop.f32.mrf.mxu3 }
  0xbe   :  { %v157_v3 = vpop.f32.mrf.mxu0 }
  0xbf   :  { %v227_v5 = vmul.f32 %v157_v3, %v157_v3 }
  0xc1   :  { %v255_v6 = vpack.c.bf16 %v227_v5, %v226_v4 }
  0xc3   :  { %522 = vmatmul.msk.bf16.gmra.mxu1 %vm304_vm1, %v255_v6  ;;  %v244_v6 = vmul.f32 %v200_v58, %v200_v58 }
  0xc5   :  { %v202_v63 = vpop.f32.mrf.mxu3 }
  0xc6   :  { %v160_v7 = vpop.f32.mrf.mxu0 }
  0xc7   :  { %v228_v12 = vmul.f32 %v160_v7, %v160_v7  ;;  %v245_v7 = vmul.f32 %v202_v63, %v202_v63 }
  0xc9   :  { %v264_v9 = vpack.c.bf16 %v245_v7, %v244_v6 }
  0xcd   :  { %v205_v4 = vpop.f32.mrf.mxu3 }
  0xce   :  { %v162_v11 = vpop.f32.mrf.mxu0 }
  0xcf   :  { %v229_v13 = vmul.f32 %v162_v11, %v162_v11 }
  0xd1   :  { %v256_v14 = vpack.c.bf16 %v229_v13, %v228_v12 }
  0xd3   :  { %523 = vmatmul.msk.bf16.gmra.mxu1 %vm304_vm1, %v256_v14 }
  0xd5   :  { %v207_v11 = vpop.f32.mrf.mxu3 }
  0xd6   :  { %v165_v15 = vpop.f32.mrf.mxu0 }
  0xd7   :  { %v230_v17 = vmul.f32 %v165_v15, %v165_v15  ;;  %v246_v15 = vmul.f32 %v205_v4, %v205_v4 }
  0xdd   :  { %v210_v14 = vpop.f32.mrf.mxu3 }
  0xde   :  { %v167_v16 = vpop.f32.mrf.mxu0 }
  0xdf   :  { %v231_v18 = vmul.f32 %v167_v16, %v167_v16  ;;  %v247_v16 = vmul.f32 %v207_v11, %v207_v11 }
  0xe1   :  { %v257_v19 = vpack.c.bf16 %v231_v18, %v230_v17  ;;  %v265_v18 = vpack.c.bf16 %v247_v16, %v246_v15 }
  0xe3   :  { %524 = vmatmul.msk.bf16.gmra.mxu1 %vm304_vm1, %v257_v19 }
  0xe6   :  { %v170_v20 = vpop.f32.mrf.mxu0 }
  0xe7   :  { %v232_v22 = vmul.f32 %v170_v20, %v170_v20  ;;  %v212_v20 = vpop.f32.mrf.mxu3 }
  0xee   :  { %v172_v21 = vpop.f32.mrf.mxu0 }
  0xef   :  { %v233_v23 = vmul.f32 %v172_v21, %v172_v21 }
  0xf1   :  { %v258_v24 = vpack.c.bf16 %v233_v23, %v232_v22  ;;  %v248_v23 = vmul.f32 %v210_v14, %v210_v14 }
  0xf3   :  { %525 = vmatmul.msk.bf16.gmra.mxu1 %vm304_vm1, %v258_v24  ;;  %v249_v24 = vmul.f32 %v212_v20, %v212_v20 }
  0xf6   :  { %v175_v25 = vpop.f32.mrf.mxu0 }
  0xf7   :  { %v234_v28 = vmul.f32 %v175_v25, %v175_v25  ;;  %v215_v25 = vpop.f32.mrf.mxu3 }
  0xfe   :  { %v177_v27 = vpop.f32.mrf.mxu0 }
  0xff   :  { %v235_v29 = vmul.f32 %v177_v27, %v177_v27  ;;  %v266_v27 = vpack.c.bf16 %v249_v24, %v248_v23  ;;  %v217_v31 = vpop.f32.mrf.mxu3 }
 0x100   :  { %v251_v33 = vmul.f32 %v217_v31, %v217_v31 }
 0x101   :  { %v259_v30 = vpack.c.bf16 %v235_v29, %v234_v28 }
 0x103   :  { %526 = vmatmul.msk.bf16.gmra.mxu1 %vm304_vm1, %v259_v30 }
 0x106   :  { %v180_v32 = vpop.f32.mrf.mxu0 }
 0x107   :  { %v236_v36 = vmul.f32 %v180_v32, %v180_v32  ;;  %v250_v32 = vmul.f32 %v215_v25, %v215_v25 }
 0x10e   :  { %v182_v35 = vpop.f32.mrf.mxu0 }
 0x10f   :  { %v237_v37 = vmul.f32 %v182_v35, %v182_v35 }
 0x110   :  { %v362_v38 = vpop.f32.mrf.mxu1 }
 0x111   :  { %v260_v39 = vpack.c.bf16 %v237_v37, %v236_v36  ;;  %v363_v40 = vadd.f32 %v714_v34, %v362_v38  ;;  %v267_v36 = vpack.c.bf16 %v251_v33, %v250_v32 }
 0x113   :  { %443 = vst.msk [vmem:[%s888_s4] sm:$0xff] %vm442_vm2, %v363_v40  ;;  %527 = vmatmul.msk.bf16.vlgmr.msra.gmra.mxu2 %vm304_vm1, %v260_v39 }
 0x118   :  { %v364_v42 = vpop.f32.mrf.mxu1 }
 0x119   :  { %v365_v43 = vadd.f32 %v714_v34, %v364_v42 }
 0x11b   :  { %444 = vst.msk [vmem:[%s888_s4 + $0x8] sm:$0xff] %vm442_vm2, %v365_v43 }
 0x120   :  { %v367_v46 = vpop.f32.mrf.mxu1 }
 0x121   :  { %v368_v49 = vadd.f32 %v714_v34, %v367_v46 }
 0x123   :  { %445 = vst.msk [vmem:[%s888_s4 + $0x10] sm:$0xff] %vm442_vm2, %v368_v49  ;;  %528 = vmatmul.msk.bf16.gmra.mxu2 %vm304_vm1, %v261_v48 }
 0x128   :  { %v369_v50 = vpop.f32.mrf.mxu1 }
 0x129   :  { %v370_v51 = vadd.f32 %v714_v34, %v369_v50 }
 0x12b   :  { %446 = vst.msk [vmem:[%s888_s4 + $0x18] sm:$0xff] %vm442_vm2, %v370_v51 }
 0x130   :  { %v372_v55 = vpop.f32.mrf.mxu1 }
 0x131   :  { %v373_v57 = vadd.f32 %v714_v34, %v372_v55 }
 0x133   :  { %447 = vst.msk [vmem:[%s888_s4 + $0x20] sm:$0xff] %vm442_vm2, %v373_v57  ;;  %529 = vmatmul.msk.bf16.gmra.mxu2 %vm304_vm1, %v262_v56 }
 0x138   :  { %v374_v59 = vpop.f32.mrf.mxu1 }
 0x139   :  { %v375_v60 = vadd.f32 %v714_v34, %v374_v59 }
 0x13b   :  { %448 = vst.msk [vmem:[%s888_s4 + $0x28] sm:$0xff] %vm442_vm2, %v375_v60 }
 0x140   :  { %v377_v0 = vpop.f32.mrf.mxu1 }
 0x141   :  { %v378_v2 = vadd.f32 %v714_v34, %v377_v0 }
 0x143   :  { %449 = vst.msk [vmem:[%s888_s4 + $0x30] sm:$0xff] %vm442_vm2, %v378_v2  ;;  %530 = vmatmul.msk.bf16.gmra.mxu2 %vm304_vm1, %v263_v1 }
 0x148   :  { %v379_v3 = vpop.f32.mrf.mxu1 }
 0x149   :  { %v380_v5 = vadd.f32 %v714_v34, %v379_v3 }
 0x14b   :  { %450 = vst.msk [vmem:[%s888_s4 + $0x38] sm:$0xff] %vm442_vm2, %v380_v5 }
 0x150   :  { %v382_v8 = vpop.f32.mrf.mxu1 }
 0x151   :  { %v383_v10 = vadd.f32 %v714_v34, %v382_v8 }
 0x153   :  { %451 = vst.msk [vmem:[%s888_s4 + $0x40] sm:$0xff] %vm442_vm2, %v383_v10  ;;  %531 = vmatmul.msk.bf16.gmra.mxu2 %vm304_vm1, %v264_v9 }
 0x158   :  { %v384_v12 = vpop.f32.mrf.mxu1 }
 0x159   :  { %v385_v13 = vadd.f32 %v714_v34, %v384_v12 }
 0x15b   :  { %452 = vst.msk [vmem:[%s888_s4 + $0x48] sm:$0xff] %vm442_vm2, %v385_v13 }
 0x160   :  { %v387_v17 = vpop.f32.mrf.mxu1 }
 0x161   :  { %v388_v19 = vadd.f32 %v714_v34, %v387_v17 }
 0x163   :  { %453 = vst.msk [vmem:[%s888_s4 + $0x50] sm:$0xff] %vm442_vm2, %v388_v19  ;;  %532 = vmatmul.msk.bf16.gmra.mxu2 %vm304_vm1, %v265_v18 }
 0x168   :  { %v389_v21 = vpop.f32.mrf.mxu1 }
 0x169   :  { %v390_v22 = vadd.f32 %v714_v34, %v389_v21 }
 0x16b   :  { %454 = vst.msk [vmem:[%s888_s4 + $0x58] sm:$0xff] %vm442_vm2, %v390_v22 }
 0x170   :  { %v392_v26 = vpop.f32.mrf.mxu1 }
 0x171   :  { %v393_v28 = vadd.f32 %v714_v34, %v392_v26 }
 0x173   :  { %455 = vst.msk [vmem:[%s888_s4 + $0x60] sm:$0xff] %vm442_vm2, %v393_v28  ;;  %533 = vmatmul.msk.bf16.gmra.mxu2 %vm304_vm1, %v266_v27 }
 0x178   :  { %v394_v29 = vpop.f32.mrf.mxu1 }
 0x179   :  { %v395_v30 = vadd.f32 %v714_v34, %v394_v29 }
 0x17b   :  { %456 = vst.msk [vmem:[%s888_s4 + $0x68] sm:$0xff] %vm442_vm2, %v395_v30 }
 0x180   :  { %v397_v35 = vpop.f32.mrf.mxu1 }
 0x181   :  { %v398_v37 = vadd.f32 %v714_v34, %v397_v35 }
 0x183   :  { %457 = vst.msk [vmem:[%s888_s4 + $0x70] sm:$0xff] %vm442_vm2, %v398_v37  ;;  %534 = vmatmul.msk.bf16.gmra.mxu2 %vm304_vm1, %v267_v36 }
 0x188   :  { %v399_v38 = vpop.f32.mrf.mxu1 }
 0x189   :  { %v400_v39 = vadd.f32 %v714_v34, %v399_v38 }
 0x18b   :  { %458 = vst.msk [vmem:[%s888_s4 + $0x78] sm:$0xff] %vm442_vm2, %v400_v39 }
 0x196   :  { %v402_v40 = vpop.f32.mrf.mxu2 }
 0x197   :  { %v403_v41 = vadd.f32 %v714_v34, %v402_v40 }
 0x199   :  { %459 = vst.msk [vmem:[%s888_s4 + $0x80] sm:$0xff] %vm442_vm2, %v403_v41 }
 0x19e   :  { %v404_v42 = vpop.f32.mrf.mxu2 }
 0x19f   :  { %v405_v43 = vadd.f32 %v714_v34, %v404_v42 }
 0x1a1   :  { %460 = vst.msk [vmem:[%s888_s4 + $0x88] sm:$0xff] %vm442_vm2, %v405_v43 }
 0x1a6   :  { %v407_v44 = vpop.f32.mrf.mxu2 }
 0x1a7   :  { %v408_v45 = vadd.f32 %v714_v34, %v407_v44 }
 0x1a9   :  { %461 = vst.msk [vmem:[%s888_s4 + $0x90] sm:$0xff] %vm442_vm2, %v408_v45 }
 0x1ae   :  { %v409_v46 = vpop.f32.mrf.mxu2 }
 0x1af   :  { %v410_v47 = vadd.f32 %v714_v34, %v409_v46 }
 0x1b1   :  { %462 = vst.msk [vmem:[%s888_s4 + $0x98] sm:$0xff] %vm442_vm2, %v410_v47 }
 0x1b6   :  { %v412_v48 = vpop.f32.mrf.mxu2 }
 0x1b7   :  { %v413_v49 = vadd.f32 %v714_v34, %v412_v48 }
 0x1b9   :  { %463 = vst.msk [vmem:[%s888_s4 + $0xa0] sm:$0xff] %vm442_vm2, %v413_v49 }
 0x1be   :  { %v414_v50 = vpop.f32.mrf.mxu2 }
 0x1bf   :  { %v415_v51 = vadd.f32 %v714_v34, %v414_v50 }
 0x1c1   :  { %464 = vst.msk [vmem:[%s888_s4 + $0xa8] sm:$0xff] %vm442_vm2, %v415_v51 }
 0x1c6   :  { %v417_v52 = vpop.f32.mrf.mxu2 }
 0x1c7   :  { %v418_v53 = vadd.f32 %v714_v34, %v417_v52 }
 0x1c9   :  { %465 = vst.msk [vmem:[%s888_s4 + $0xb0] sm:$0xff] %vm442_vm2, %v418_v53 }
 0x1ce   :  { %v419_v54 = vpop.f32.mrf.mxu2 }
 0x1cf   :  { %v420_v55 = vadd.f32 %v714_v34, %v419_v54 }
 0x1d1   :  { %466 = vst.msk [vmem:[%s888_s4 + $0xb8] sm:$0xff] %vm442_vm2, %v420_v55 }
 0x1d6   :  { %v422_v56 = vpop.f32.mrf.mxu2 }
 0x1d7   :  { %v423_v57 = vadd.f32 %v714_v34, %v422_v56 }
 0x1d9   :  { %467 = vst.msk [vmem:[%s888_s4 + $0xc0] sm:$0xff] %vm442_vm2, %v423_v57 }
 0x1de   :  { %v424_v58 = vpop.f32.mrf.mxu2 }
 0x1df   :  { %v425_v59 = vadd.f32 %v714_v34, %v424_v58 }
 0x1e1   :  { %468 = vst.msk [vmem:[%s888_s4 + $0xc8] sm:$0xff] %vm442_vm2, %v425_v59 }
 0x1e6   :  { %v427_v60 = vpop.f32.mrf.mxu2 }
 0x1e7   :  { %v428_v61 = vadd.f32 %v714_v34, %v427_v60 }
 0x1e9   :  { %469 = vst.msk [vmem:[%s888_s4 + $0xd0] sm:$0xff] %vm442_vm2, %v428_v61 }
 0x1ee   :  { %v429_v62 = vpop.f32.mrf.mxu2 }
 0x1ef   :  { %v430_v63 = vadd.f32 %v714_v34, %v429_v62 }
 0x1f1   :  { %470 = vst.msk [vmem:[%s888_s4 + $0xd8] sm:$0xff] %vm442_vm2, %v430_v63 }
 0x1f6   :  { %v432_v0 = vpop.f32.mrf.mxu2 }
 0x1f7   :  { %v433_v1 = vadd.f32 %v714_v34, %v432_v0 }
 0x1f9   :  { %471 = vst.msk [vmem:[%s888_s4 + $0xe0] sm:$0xff] %vm442_vm2, %v433_v1 }
 0x1fe   :  { %v434_v2 = vpop.f32.mrf.mxu2 }
 0x1ff   :  { %v435_v3 = vadd.f32 %v714_v34, %v434_v2 }
 0x201   :  { %472 = vst.msk [vmem:[%s888_s4 + $0xe8] sm:$0xff] %vm442_vm2, %v435_v3 }
 0x206   :  { %v437_v4 = vpop.f32.mrf.mxu2 }
 0x207   :  { %v438_v5 = vadd.f32 %v714_v34, %v437_v4 }
 0x209   :  { %473 = vst.msk [vmem:[%s888_s4 + $0xf0] sm:$0xff] %vm442_vm2, %v438_v5 }
 0x20e   :  { %v439_v6 = vpop.f32.mrf.mxu2 }
 0x20f   :  { %v440_v7 = vadd.f32 %v714_v34, %v439_v6 }
 0x211   :  { %474 = vst.msk [vmem:[%s888_s4 + $0xf8] sm:$0xff] %vm442_vm2, %v440_v7 }

</bundles_post_ra>
